<compile_context>
chip_gen: v7x
topology: tpu7x:2x2x1
jax: 0.10.0
libtpu: 0.0.40
codegen_flags: <defaults>
</compile_context>

<pallas_src>
import functools

import jax
import jax.numpy as jnp
from jax import lax
from jax.experimental import pallas as pl
from jax.experimental.pallas import tpu as pltpu


LANES = 128          # vreg lane width (rows live on the lane axis)
STRIP = 32           # sublanes per register-resident strip (4 f32 vregs/slab)


def _ozevqvae_kernel(m0_ref, m1_ref, cadj_ref, dec_ref, x_ref, o_ref):
    """Nearest-code selection + decoded-value select on lane-dense slabs.

    m0_ref, m1_ref : (K,) SMEM   folded projection rows (-2 * W_enc @ C^T)
    cadj_ref       : (K,) SMEM   per-code offset |c_k|^2 - 2<b_enc, c_k>
    dec_ref        : (K,) SMEM   decoded codebook c_k @ W_dec + b_dec
    x_ref          : (2, bs, 128) VMEM  lane-dense input channel slabs
    o_ref          : (bs, 128)    VMEM  lane-dense decoded output slab
    """
    num_codebook = m0_ref.shape[0]
    bs = o_ref.shape[0]
    n_strips = bs // STRIP

    # Hoist the tiny per-code constants off SMEM once (loop-invariant scalars).
    m0 = [m0_ref[k] for k in range(num_codebook)]
    m1 = [m1_ref[k] for k in range(num_codebook)]
    cadj = [cadj_ref[k] for k in range(num_codebook)]
    dec = [dec_ref[k] for k in range(num_codebook)]

    def strip_body(s, carry):
        r0 = pl.multiple_of(s * STRIP, STRIP)
        x0 = x_ref[0, pl.ds(r0, STRIP), :]
        x1 = x_ref[1, pl.ds(r0, STRIP), :]
        # Running argmin/select over K, fully unrolled; all temporaries stay
        # vreg-resident across the whole K sweep (no VMEM round-trips/code).
        # Strict '<' keeps the first minimal index on ties (torch.argmin).
        best_s = x0 * m0[0] + x1 * m1[0] + cadj[0]
        best_v = jnp.full_like(x0, dec[0])
        for k in range(1, num_codebook):
            sc = x0 * m0[k] + x1 * m1[k] + cadj[k]
            better = sc < best_s
            best_s = jnp.where(better, sc, best_s)
            best_v = jnp.where(better, dec[k], best_v)
        o_ref[pl.ds(r0, STRIP), :] = best_v.astype(o_ref.dtype)
        return carry

    lax.fori_loop(0, n_strips, strip_body, 0)


def _fold_params(params):
    """Fold the linear encoder/decoder into per-code scalars (valid only while
    the backbone encode/decode stay linear)."""
    we = params["W_enc"].astype(jnp.float32)      # (2, D)
    be = params["b_enc"].astype(jnp.float32)      # (1, D)
    cb = params["codebook"].astype(jnp.float32)   # (K, D)
    wd = params["W_dec"].astype(jnp.float32)      # (D, 1)
    bd = params["b_dec"].astype(jnp.float32)      # (1, 1)

    proj = -2.0 * jnp.dot(we, cb.T)                                # (2, K)
    cadj = jnp.sum(cb * cb, axis=-1) - 2.0 * jnp.dot(be, cb.T)[0]  # (K,)
    dec = jnp.dot(cb, wd)[:, 0] + bd[0, 0]                         # (K,)
    return proj[0], proj[1], cadj, dec


@functools.partial(jax.jit, static_argnames=("block_sublanes",))
def oze_vqvae_forward(x, params, block_sublanes=4096):
    """x: (T, B, 2) float32 -> (T, B, 1) float32."""
    T, B, F = x.shape
    assert F == 2, "OzeVQVAE expects input feature dim 2"
    n_rows = T * B

    m0, m1, cadj, dec = _fold_params(params)
    num_codebook = cadj.shape[0]

    # ---- tile geometry (all static Python ints under jit) -------------------
    block_sublanes = max(STRIP, (int(block_sublanes) // STRIP) * STRIP)
    sub_needed = pl.cdiv(n_rows, LANES)                 # sublanes actually used
    sub_strip = STRIP * pl.cdiv(sub_needed, STRIP)      # strip-aligned sublanes
    bs = min(block_sublanes, sub_strip)
    if sub_strip >= 2 * STRIP:
        # Cap so the row grid keeps >= 2 blocks: v7x has 2 TensorCores and the
        # parallel row axis is the only thing that shards work across them.
        half = STRIP * pl.cdiv(sub_strip // 2, STRIP)
        bs = max(STRIP, min(bs, half))
    sub_pad = bs * pl.cdiv(sub_strip, bs)
    n_pad = sub_pad * LANES
    grid = (sub_pad // bs,)

    # ---- single fused relayout: (T,B,2) -> padded (2, sub_pad, 128) ---------
    xf = x.reshape(n_rows, F).astype(jnp.float32).T             # (2, n_rows)
    x_slab = jnp.pad(xf, ((0, 0), (0, n_pad - n_rows))).reshape(
        2, sub_pad, LANES)

    smem_spec = pl.BlockSpec(memory_space=pltpu.MemorySpace.SMEM)
    x_spec = pl.BlockSpec((2, bs, LANES), lambda i: (0, i, 0))
    o_spec = pl.BlockSpec((bs, LANES), lambda i: (i, 0))

    cost = pl.CostEstimate(
        flops=7 * num_codebook * n_pad,      # 2 FMA + cmp + 2 select per code
        transcendentals=0,
        bytes_accessed=12 * n_pad,           # 2 f32 in-slabs + 1 f32 out-slab
    )

    out_slab = pl.pallas_call(
        _ozevqvae_kernel,
        out_shape=jax.ShapeDtypeStruct((sub_pad, LANES), jnp.float32),
        grid=grid,
        in_specs=[smem_spec, smem_spec, smem_spec, smem_spec, x_spec],
        out_specs=o_spec,
        compiler_params=pltpu.CompilerParams(
            dimension_semantics=("parallel",),
            vmem_limit_bytes=32 * 1024 * 1024,
        ),
        cost_estimate=cost,
    )(m0, m1, cadj, dec, x_slab)

    out_flat = out_slab.reshape(-1)
    if n_pad != n_rows:                      # static; skip slice when exact
        out_flat = out_flat[:n_rows]
    return out_flat.reshape(T, B, 1)


def init_params(key, num_codebook, dim_codebook):
    k1, k2, k3, k4, k5 = jax.random.split(key, 5)
    return {
        "W_enc": jax.random.normal(k1, (2, dim_codebook), jnp.float32) * 0.5,
        "b_enc": jax.random.normal(k2, (1, dim_codebook), jnp.float32) * 0.1,
        "codebook": jax.random.normal(k3, (num_codebook, dim_codebook),
                                      jnp.float32),
        "W_dec": jax.random.normal(k4, (dim_codebook, 1), jnp.float32) * 0.5,
        "b_dec": jax.random.normal(k5, (1, 1), jnp.float32) * 0.1,
    }


def _reference_forward(x, params):
    """Pure-JAX reference: explicit encode -> L2 nearest-code -> decode."""
    T, B, _ = x.shape
    xf = x.reshape(T * B, 2).astype(jnp.float32)
    z = xf @ params["W_enc"] + params["b_enc"]
    c = params["codebook"]
    dist = jnp.sum((z[:, None, :] - c[None, :, :]) ** 2, axis=-1)
    idx = jnp.argmin(dist, axis=-1)
    q = c[idx]
    out = q @ params["W_dec"] + params["b_dec"]
    return out.reshape(T, B, 1)


if __name__ == "__main__":
    num_codebook = 16
    dim_codebook = 32

    key = jax.random.PRNGKey(0)
    kx1, kx2, kp = jax.random.split(key, 3)
    params = init_params(kp, num_codebook, dim_codebook)

    # (1) Small deterministic case consistent with the module's contract.
    T, B = 8, 2
    x = jax.random.normal(kx1, (T, B, 2), jnp.float32)
    out = jax.block_until_ready(oze_vqvae_forward(x, params))
    assert out.shape == (T, B, 1), out.shape
    ref = jax.block_until_ready(_reference_forward(x, params))
    assert jnp.allclose(out, ref, atol=1e-4, rtol=1e-4)

    # (2) Larger, non-multiple-of-128 row count: exercises padding and the
    #     multi-block (>= 2 tiles) grid path.
    T2, B2 = 301, 50
    x2 = jax.random.normal(kx2, (T2, B2, 2), jnp.float32)
    out2 = jax.block_until_ready(oze_vqvae_forward(x2, params))
    assert out2.shape == (T2, B2, 1), out2.shape
    ref2 = jax.block_until_ready(_reference_forward(x2, params))
    assert jnp.allclose(out2, ref2, atol=1e-4, rtol=1e-4)

    print("KERNEL_OK")
</pallas_src>

<mosaic_0001>
module attributes {stable_mosaic.version = 11 : i64} {
  func.func @_ozevqvae_kernel(%arg0: i32, %arg1: memref<16xf32, #tpu.memory_space<smem>>, %arg2: memref<16xf32, #tpu.memory_space<smem>>, %arg3: memref<16xf32, #tpu.memory_space<smem>>, %arg4: memref<16xf32, #tpu.memory_space<smem>>, %arg5: memref<2x32x128xf32, #tpu.memory_space<vmem>>, %arg6: memref<32x128xf32, #tpu.memory_space<vmem>>) attributes {dimension_semantics = [#tpu.dimension_semantics<parallel>], iteration_bounds = array<i64: 1>, scalar_prefetch = 0 : i64, scratch_operands = 0 : i64, tpu.core_type = #tpu.core_type<tc>, window_params = [{transform_indices = @transform_0, window_bounds = array<i64: 16>}, {transform_indices = @transform_1, window_bounds = array<i64: 16>}, {transform_indices = @transform_2, window_bounds = array<i64: 16>}, {transform_indices = @transform_3, window_bounds = array<i64: 16>}, {transform_indices = @transform_4, window_bounds = array<i64: 2, 32, 128>}, {transform_indices = @transform_5, window_bounds = array<i64: 32, 128>}]} {
    %c0 = arith.constant 0 : index
    %0 = memref.load %arg1[%c0] : memref<16xf32, #tpu.memory_space<smem>>
    %c1 = arith.constant 1 : index
    %1 = memref.load %arg1[%c1] : memref<16xf32, #tpu.memory_space<smem>>
    %c2 = arith.constant 2 : index
    %2 = memref.load %arg1[%c2] : memref<16xf32, #tpu.memory_space<smem>>
    %c3 = arith.constant 3 : index
    %3 = memref.load %arg1[%c3] : memref<16xf32, #tpu.memory_space<smem>>
    %c4 = arith.constant 4 : index
    %4 = memref.load %arg1[%c4] : memref<16xf32, #tpu.memory_space<smem>>
    %c5 = arith.constant 5 : index
    %5 = memref.load %arg1[%c5] : memref<16xf32, #tpu.memory_space<smem>>
    %c6 = arith.constant 6 : index
    %6 = memref.load %arg1[%c6] : memref<16xf32, #tpu.memory_space<smem>>
    %c7 = arith.constant 7 : index
    %7 = memref.load %arg1[%c7] : memref<16xf32, #tpu.memory_space<smem>>
    %c8 = arith.constant 8 : index
    %8 = memref.load %arg1[%c8] : memref<16xf32, #tpu.memory_space<smem>>
    %c9 = arith.constant 9 : index
    %9 = memref.load %arg1[%c9] : memref<16xf32, #tpu.memory_space<smem>>
    %c10 = arith.constant 10 : index
    %10 = memref.load %arg1[%c10] : memref<16xf32, #tpu.memory_space<smem>>
    %c11 = arith.constant 11 : index
    %11 = memref.load %arg1[%c11] : memref<16xf32, #tpu.memory_space<smem>>
    %c12 = arith.constant 12 : index
    %12 = memref.load %arg1[%c12] : memref<16xf32, #tpu.memory_space<smem>>
    %c13 = arith.constant 13 : index
    %13 = memref.load %arg1[%c13] : memref<16xf32, #tpu.memory_space<smem>>
    %c14 = arith.constant 14 : index
    %14 = memref.load %arg1[%c14] : memref<16xf32, #tpu.memory_space<smem>>
    %c15 = arith.constant 15 : index
    %15 = memref.load %arg1[%c15] : memref<16xf32, #tpu.memory_space<smem>>
    %c0_0 = arith.constant 0 : index
    %16 = memref.load %arg2[%c0_0] : memref<16xf32, #tpu.memory_space<smem>>
    %c1_1 = arith.constant 1 : index
    %17 = memref.load %arg2[%c1_1] : memref<16xf32, #tpu.memory_space<smem>>
    %c2_2 = arith.constant 2 : index
    %18 = memref.load %arg2[%c2_2] : memref<16xf32, #tpu.memory_space<smem>>
    %c3_3 = arith.constant 3 : index
    %19 = memref.load %arg2[%c3_3] : memref<16xf32, #tpu.memory_space<smem>>
    %c4_4 = arith.constant 4 : index
    %20 = memref.load %arg2[%c4_4] : memref<16xf32, #tpu.memory_space<smem>>
    %c5_5 = arith.constant 5 : index
    %21 = memref.load %arg2[%c5_5] : memref<16xf32, #tpu.memory_space<smem>>
    %c6_6 = arith.constant 6 : index
    %22 = memref.load %arg2[%c6_6] : memref<16xf32, #tpu.memory_space<smem>>
    %c7_7 = arith.constant 7 : index
    %23 = memref.load %arg2[%c7_7] : memref<16xf32, #tpu.memory_space<smem>>
    %c8_8 = arith.constant 8 : index
    %24 = memref.load %arg2[%c8_8] : memref<16xf32, #tpu.memory_space<smem>>
    %c9_9 = arith.constant 9 : index
    %25 = memref.load %arg2[%c9_9] : memref<16xf32, #tpu.memory_space<smem>>
    %c10_10 = arith.constant 10 : index
    %26 = memref.load %arg2[%c10_10] : memref<16xf32, #tpu.memory_space<smem>>
    %c11_11 = arith.constant 11 : index
    %27 = memref.load %arg2[%c11_11] : memref<16xf32, #tpu.memory_space<smem>>
    %c12_12 = arith.constant 12 : index
    %28 = memref.load %arg2[%c12_12] : memref<16xf32, #tpu.memory_space<smem>>
    %c13_13 = arith.constant 13 : index
    %29 = memref.load %arg2[%c13_13] : memref<16xf32, #tpu.memory_space<smem>>
    %c14_14 = arith.constant 14 : index
    %30 = memref.load %arg2[%c14_14] : memref<16xf32, #tpu.memory_space<smem>>
    %c15_15 = arith.constant 15 : index
    %31 = memref.load %arg2[%c15_15] : memref<16xf32, #tpu.memory_space<smem>>
    %c0_16 = arith.constant 0 : index
    %32 = memref.load %arg3[%c0_16] : memref<16xf32, #tpu.memory_space<smem>>
    %c1_17 = arith.constant 1 : index
    %33 = memref.load %arg3[%c1_17] : memref<16xf32, #tpu.memory_space<smem>>
    %c2_18 = arith.constant 2 : index
    %34 = memref.load %arg3[%c2_18] : memref<16xf32, #tpu.memory_space<smem>>
    %c3_19 = arith.constant 3 : index
    %35 = memref.load %arg3[%c3_19] : memref<16xf32, #tpu.memory_space<smem>>
    %c4_20 = arith.constant 4 : index
    %36 = memref.load %arg3[%c4_20] : memref<16xf32, #tpu.memory_space<smem>>
    %c5_21 = arith.constant 5 : index
    %37 = memref.load %arg3[%c5_21] : memref<16xf32, #tpu.memory_space<smem>>
    %c6_22 = arith.constant 6 : index
    %38 = memref.load %arg3[%c6_22] : memref<16xf32, #tpu.memory_space<smem>>
    %c7_23 = arith.constant 7 : index
    %39 = memref.load %arg3[%c7_23] : memref<16xf32, #tpu.memory_space<smem>>
    %c8_24 = arith.constant 8 : index
    %40 = memref.load %arg3[%c8_24] : memref<16xf32, #tpu.memory_space<smem>>
    %c9_25 = arith.constant 9 : index
    %41 = memref.load %arg3[%c9_25] : memref<16xf32, #tpu.memory_space<smem>>
    %c10_26 = arith.constant 10 : index
    %42 = memref.load %arg3[%c10_26] : memref<16xf32, #tpu.memory_space<smem>>
    %c11_27 = arith.constant 11 : index
    %43 = memref.load %arg3[%c11_27] : memref<16xf32, #tpu.memory_space<smem>>
    %c12_28 = arith.constant 12 : index
    %44 = memref.load %arg3[%c12_28] : memref<16xf32, #tpu.memory_space<smem>>
    %c13_29 = arith.constant 13 : index
    %45 = memref.load %arg3[%c13_29] : memref<16xf32, #tpu.memory_space<smem>>
    %c14_30 = arith.constant 14 : index
    %46 = memref.load %arg3[%c14_30] : memref<16xf32, #tpu.memory_space<smem>>
    %c15_31 = arith.constant 15 : index
    %47 = memref.load %arg3[%c15_31] : memref<16xf32, #tpu.memory_space<smem>>
    %c0_32 = arith.constant 0 : index
    %48 = memref.load %arg4[%c0_32] : memref<16xf32, #tpu.memory_space<smem>>
    %c1_33 = arith.constant 1 : index
    %49 = memref.load %arg4[%c1_33] : memref<16xf32, #tpu.memory_space<smem>>
    %c2_34 = arith.constant 2 : index
    %50 = memref.load %arg4[%c2_34] : memref<16xf32, #tpu.memory_space<smem>>
    %c3_35 = arith.constant 3 : index
    %51 = memref.load %arg4[%c3_35] : memref<16xf32, #tpu.memory_space<smem>>
    %c4_36 = arith.constant 4 : index
    %52 = memref.load %arg4[%c4_36] : memref<16xf32, #tpu.memory_space<smem>>
    %c5_37 = arith.constant 5 : index
    %53 = memref.load %arg4[%c5_37] : memref<16xf32, #tpu.memory_space<smem>>
    %c6_38 = arith.constant 6 : index
    %54 = memref.load %arg4[%c6_38] : memref<16xf32, #tpu.memory_space<smem>>
    %c7_39 = arith.constant 7 : index
    %55 = memref.load %arg4[%c7_39] : memref<16xf32, #tpu.memory_space<smem>>
    %c8_40 = arith.constant 8 : index
    %56 = memref.load %arg4[%c8_40] : memref<16xf32, #tpu.memory_space<smem>>
    %c9_41 = arith.constant 9 : index
    %57 = memref.load %arg4[%c9_41] : memref<16xf32, #tpu.memory_space<smem>>
    %c10_42 = arith.constant 10 : index
    %58 = memref.load %arg4[%c10_42] : memref<16xf32, #tpu.memory_space<smem>>
    %c11_43 = arith.constant 11 : index
    %59 = memref.load %arg4[%c11_43] : memref<16xf32, #tpu.memory_space<smem>>
    %c12_44 = arith.constant 12 : index
    %60 = memref.load %arg4[%c12_44] : memref<16xf32, #tpu.memory_space<smem>>
    %c13_45 = arith.constant 13 : index
    %61 = memref.load %arg4[%c13_45] : memref<16xf32, #tpu.memory_space<smem>>
    %c14_46 = arith.constant 14 : index
    %62 = memref.load %arg4[%c14_46] : memref<16xf32, #tpu.memory_space<smem>>
    %c15_47 = arith.constant 15 : index
    %63 = memref.load %arg4[%c15_47] : memref<16xf32, #tpu.memory_space<smem>>
    %c0_i32 = arith.constant 0 : i32
    %c32_i32 = arith.constant 32 : i32
    %64 = arith.muli %c0_i32, %c32_i32 : i32
    %65 = tpu.assume_multiple %64, 32 : i32
    %c0_48 = arith.constant 0 : index
    %66 = arith.index_cast %65 : i32 to index
    %c0_49 = arith.constant 0 : index
    %67 = vector.load %arg5[%c0_48, %66, %c0_49] : memref<2x32x128xf32, #tpu.memory_space<vmem>>, vector<1x32x128xf32>
    %68 = vector.shape_cast %67 : vector<1x32x128xf32> to vector<32x128xf32>
    %c1_50 = arith.constant 1 : index
    %69 = arith.index_cast %65 : i32 to index
    %c0_51 = arith.constant 0 : index
    %70 = vector.load %arg5[%c1_50, %69, %c0_51] : memref<2x32x128xf32, #tpu.memory_space<vmem>>, vector<1x32x128xf32>
    %71 = vector.shape_cast %70 : vector<1x32x128xf32> to vector<32x128xf32>
    %72 = vector.broadcast %0 : f32 to vector<32x128xf32>
    %73 = arith.mulf %68, %72 : vector<32x128xf32>
    %74 = vector.broadcast %16 : f32 to vector<32x128xf32>
    %75 = arith.mulf %71, %74 : vector<32x128xf32>
    %76 = arith.addf %73, %75 : vector<32x128xf32>
    %77 = vector.broadcast %32 : f32 to vector<32x128xf32>
    %78 = arith.addf %76, %77 : vector<32x128xf32>
    %79 = vector.broadcast %48 : f32 to vector<32x128xf32>
    %80 = vector.broadcast %1 : f32 to vector<32x128xf32>
    %81 = arith.mulf %68, %80 : vector<32x128xf32>
    %82 = vector.broadcast %17 : f32 to vector<32x128xf32>
    %83 = arith.mulf %71, %82 : vector<32x128xf32>
    %84 = arith.addf %81, %83 : vector<32x128xf32>
    %85 = vector.broadcast %33 : f32 to vector<32x128xf32>
    %86 = arith.addf %84, %85 : vector<32x128xf32>
    %87 = arith.cmpf olt, %86, %78 : vector<32x128xf32>
    %88 = arith.select %87, %86, %78 : vector<32x128xi1>, vector<32x128xf32>
    %89 = vector.broadcast %49 : f32 to vector<32x128xf32>
    %90 = arith.select %87, %89, %79 : vector<32x128xi1>, vector<32x128xf32>
    %91 = vector.broadcast %2 : f32 to vector<32x128xf32>
    %92 = arith.mulf %68, %91 : vector<32x128xf32>
    %93 = vector.broadcast %18 : f32 to vector<32x128xf32>
    %94 = arith.mulf %71, %93 : vector<32x128xf32>
    %95 = arith.addf %92, %94 : vector<32x128xf32>
    %96 = vector.broadcast %34 : f32 to vector<32x128xf32>
    %97 = arith.addf %95, %96 : vector<32x128xf32>
    %98 = arith.cmpf olt, %97, %88 : vector<32x128xf32>
    %99 = arith.select %98, %97, %88 : vector<32x128xi1>, vector<32x128xf32>
    %100 = vector.broadcast %50 : f32 to vector<32x128xf32>
    %101 = arith.select %98, %100, %90 : vector<32x128xi1>, vector<32x128xf32>
    %102 = vector.broadcast %3 : f32 to vector<32x128xf32>
    %103 = arith.mulf %68, %102 : vector<32x128xf32>
    %104 = vector.broadcast %19 : f32 to vector<32x128xf32>
    %105 = arith.mulf %71, %104 : vector<32x128xf32>
    %106 = arith.addf %103, %105 : vector<32x128xf32>
    %107 = vector.broadcast %35 : f32 to vector<32x128xf32>
    %108 = arith.addf %106, %107 : vector<32x128xf32>
    %109 = arith.cmpf olt, %108, %99 : vector<32x128xf32>
    %110 = arith.select %109, %108, %99 : vector<32x128xi1>, vector<32x128xf32>
    %111 = vector.broadcast %51 : f32 to vector<32x128xf32>
    %112 = arith.select %109, %111, %101 : vector<32x128xi1>, vector<32x128xf32>
    %113 = vector.broadcast %4 : f32 to vector<32x128xf32>
    %114 = arith.mulf %68, %113 : vector<32x128xf32>
    %115 = vector.broadcast %20 : f32 to vector<32x128xf32>
    %116 = arith.mulf %71, %115 : vector<32x128xf32>
    %117 = arith.addf %114, %116 : vector<32x128xf32>
    %118 = vector.broadcast %36 : f32 to vector<32x128xf32>
    %119 = arith.addf %117, %118 : vector<32x128xf32>
    %120 = arith.cmpf olt, %119, %110 : vector<32x128xf32>
    %121 = arith.select %120, %119, %110 : vector<32x128xi1>, vector<32x128xf32>
    %122 = vector.broadcast %52 : f32 to vector<32x128xf32>
    %123 = arith.select %120, %122, %112 : vector<32x128xi1>, vector<32x128xf32>
    %124 = vector.broadcast %5 : f32 to vector<32x128xf32>
    %125 = arith.mulf %68, %124 : vector<32x128xf32>
    %126 = vector.broadcast %21 : f32 to vector<32x128xf32>
    %127 = arith.mulf %71, %126 : vector<32x128xf32>
    %128 = arith.addf %125, %127 : vector<32x128xf32>
    %129 = vector.broadcast %37 : f32 to vector<32x128xf32>
    %130 = arith.addf %128, %129 : vector<32x128xf32>
    %131 = arith.cmpf olt, %130, %121 : vector<32x128xf32>
    %132 = arith.select %131, %130, %121 : vector<32x128xi1>, vector<32x128xf32>
    %133 = vector.broadcast %53 : f32 to vector<32x128xf32>
    %134 = arith.select %131, %133, %123 : vector<32x128xi1>, vector<32x128xf32>
    %135 = vector.broadcast %6 : f32 to vector<32x128xf32>
    %136 = arith.mulf %68, %135 : vector<32x128xf32>
    %137 = vector.broadcast %22 : f32 to vector<32x128xf32>
    %138 = arith.mulf %71, %137 : vector<32x128xf32>
    %139 = arith.addf %136, %138 : vector<32x128xf32>
    %140 = vector.broadcast %38 : f32 to vector<32x128xf32>
    %141 = arith.addf %139, %140 : vector<32x128xf32>
    %142 = arith.cmpf olt, %141, %132 : vector<32x128xf32>
    %143 = arith.select %142, %141, %132 : vector<32x128xi1>, vector<32x128xf32>
    %144 = vector.broadcast %54 : f32 to vector<32x128xf32>
    %145 = arith.select %142, %144, %134 : vector<32x128xi1>, vector<32x128xf32>
    %146 = vector.broadcast %7 : f32 to vector<32x128xf32>
    %147 = arith.mulf %68, %146 : vector<32x128xf32>
    %148 = vector.broadcast %23 : f32 to vector<32x128xf32>
    %149 = arith.mulf %71, %148 : vector<32x128xf32>
    %150 = arith.addf %147, %149 : vector<32x128xf32>
    %151 = vector.broadcast %39 : f32 to vector<32x128xf32>
    %152 = arith.addf %150, %151 : vector<32x128xf32>
    %153 = arith.cmpf olt, %152, %143 : vector<32x128xf32>
    %154 = arith.select %153, %152, %143 : vector<32x128xi1>, vector<32x128xf32>
    %155 = vector.broadcast %55 : f32 to vector<32x128xf32>
    %156 = arith.select %153, %155, %145 : vector<32x128xi1>, vector<32x128xf32>
    %157 = vector.broadcast %8 : f32 to vector<32x128xf32>
    %158 = arith.mulf %68, %157 : vector<32x128xf32>
    %159 = vector.broadcast %24 : f32 to vector<32x128xf32>
    %160 = arith.mulf %71, %159 : vector<32x128xf32>
    %161 = arith.addf %158, %160 : vector<32x128xf32>
    %162 = vector.broadcast %40 : f32 to vector<32x128xf32>
    %163 = arith.addf %161, %162 : vector<32x128xf32>
    %164 = arith.cmpf olt, %163, %154 : vector<32x128xf32>
    %165 = arith.select %164, %163, %154 : vector<32x128xi1>, vector<32x128xf32>
    %166 = vector.broadcast %56 : f32 to vector<32x128xf32>
    %167 = arith.select %164, %166, %156 : vector<32x128xi1>, vector<32x128xf32>
    %168 = vector.broadcast %9 : f32 to vector<32x128xf32>
    %169 = arith.mulf %68, %168 : vector<32x128xf32>
    %170 = vector.broadcast %25 : f32 to vector<32x128xf32>
    %171 = arith.mulf %71, %170 : vector<32x128xf32>
    %172 = arith.addf %169, %171 : vector<32x128xf32>
    %173 = vector.broadcast %41 : f32 to vector<32x128xf32>
    %174 = arith.addf %172, %173 : vector<32x128xf32>
    %175 = arith.cmpf olt, %174, %165 : vector<32x128xf32>
    %176 = arith.select %175, %174, %165 : vector<32x128xi1>, vector<32x128xf32>
    %177 = vector.broadcast %57 : f32 to vector<32x128xf32>
    %178 = arith.select %175, %177, %167 : vector<32x128xi1>, vector<32x128xf32>
    %179 = vector.broadcast %10 : f32 to vector<32x128xf32>
    %180 = arith.mulf %68, %179 : vector<32x128xf32>
    %181 = vector.broadcast %26 : f32 to vector<32x128xf32>
    %182 = arith.mulf %71, %181 : vector<32x128xf32>
    %183 = arith.addf %180, %182 : vector<32x128xf32>
    %184 = vector.broadcast %42 : f32 to vector<32x128xf32>
    %185 = arith.addf %183, %184 : vector<32x128xf32>
    %186 = arith.cmpf olt, %185, %176 : vector<32x128xf32>
    %187 = arith.select %186, %185, %176 : vector<32x128xi1>, vector<32x128xf32>
    %188 = vector.broadcast %58 : f32 to vector<32x128xf32>
    %189 = arith.select %186, %188, %178 : vector<32x128xi1>, vector<32x128xf32>
    %190 = vector.broadcast %11 : f32 to vector<32x128xf32>
    %191 = arith.mulf %68, %190 : vector<32x128xf32>
    %192 = vector.broadcast %27 : f32 to vector<32x128xf32>
    %193 = arith.mulf %71, %192 : vector<32x128xf32>
    %194 = arith.addf %191, %193 : vector<32x128xf32>
    %195 = vector.broadcast %43 : f32 to vector<32x128xf32>
    %196 = arith.addf %194, %195 : vector<32x128xf32>
    %197 = arith.cmpf olt, %196, %187 : vector<32x128xf32>
    %198 = arith.select %197, %196, %187 : vector<32x128xi1>, vector<32x128xf32>
    %199 = vector.broadcast %59 : f32 to vector<32x128xf32>
    %200 = arith.select %197, %199, %189 : vector<32x128xi1>, vector<32x128xf32>
    %201 = vector.broadcast %12 : f32 to vector<32x128xf32>
    %202 = arith.mulf %68, %201 : vector<32x128xf32>
    %203 = vector.broadcast %28 : f32 to vector<32x128xf32>
    %204 = arith.mulf %71, %203 : vector<32x128xf32>
    %205 = arith.addf %202, %204 : vector<32x128xf32>
    %206 = vector.broadcast %44 : f32 to vector<32x128xf32>
    %207 = arith.addf %205, %206 : vector<32x128xf32>
    %208 = arith.cmpf olt, %207, %198 : vector<32x128xf32>
    %209 = arith.select %208, %207, %198 : vector<32x128xi1>, vector<32x128xf32>
    %210 = vector.broadcast %60 : f32 to vector<32x128xf32>
    %211 = arith.select %208, %210, %200 : vector<32x128xi1>, vector<32x128xf32>
    %212 = vector.broadcast %13 : f32 to vector<32x128xf32>
    %213 = arith.mulf %68, %212 : vector<32x128xf32>
    %214 = vector.broadcast %29 : f32 to vector<32x128xf32>
    %215 = arith.mulf %71, %214 : vector<32x128xf32>
    %216 = arith.addf %213, %215 : vector<32x128xf32>
    %217 = vector.broadcast %45 : f32 to vector<32x128xf32>
    %218 = arith.addf %216, %217 : vector<32x128xf32>
    %219 = arith.cmpf olt, %218, %209 : vector<32x128xf32>
    %220 = arith.select %219, %218, %209 : vector<32x128xi1>, vector<32x128xf32>
    %221 = vector.broadcast %61 : f32 to vector<32x128xf32>
    %222 = arith.select %219, %221, %211 : vector<32x128xi1>, vector<32x128xf32>
    %223 = vector.broadcast %14 : f32 to vector<32x128xf32>
    %224 = arith.mulf %68, %223 : vector<32x128xf32>
    %225 = vector.broadcast %30 : f32 to vector<32x128xf32>
    %226 = arith.mulf %71, %225 : vector<32x128xf32>
    %227 = arith.addf %224, %226 : vector<32x128xf32>
    %228 = vector.broadcast %46 : f32 to vector<32x128xf32>
    %229 = arith.addf %227, %228 : vector<32x128xf32>
    %230 = arith.cmpf olt, %229, %220 : vector<32x128xf32>
    %231 = arith.select %230, %229, %220 : vector<32x128xi1>, vector<32x128xf32>
    %232 = vector.broadcast %62 : f32 to vector<32x128xf32>
    %233 = arith.select %230, %232, %222 : vector<32x128xi1>, vector<32x128xf32>
    %234 = vector.broadcast %15 : f32 to vector<32x128xf32>
    %235 = arith.mulf %68, %234 : vector<32x128xf32>
    %236 = vector.broadcast %31 : f32 to vector<32x128xf32>
    %237 = arith.mulf %71, %236 : vector<32x128xf32>
    %238 = arith.addf %235, %237 : vector<32x128xf32>
    %239 = vector.broadcast %47 : f32 to vector<32x128xf32>
    %240 = arith.addf %238, %239 : vector<32x128xf32>
    %241 = arith.cmpf olt, %240, %231 : vector<32x128xf32>
    %242 = vector.broadcast %63 : f32 to vector<32x128xf32>
    %243 = arith.select %241, %242, %233 : vector<32x128xi1>, vector<32x128xf32>
    %244 = arith.index_cast %65 : i32 to index
    %c0_52 = arith.constant 0 : index
    %245 = vector.load %arg6[%244, %c0_52] : memref<32x128xf32, #tpu.memory_space<vmem>>, vector<32x128xf32>
    tpu.vector_store %arg6[%244, %c0_52], %243 {strides = array<i32>} : memref<32x128xf32, #tpu.memory_space<vmem>>, vector<32x128xf32>,
    %c1_i32 = arith.constant 1 : i32
    return
  }
  func.func @transform_0(%arg0: i32) -> i32 {
    %c0_i32 = arith.constant 0 : i32
    %c0_i32_0 = arith.constant 0 : i32
    return %c0_i32 : i32
  }
  func.func @transform_1(%arg0: i32) -> i32 {
    %c0_i32 = arith.constant 0 : i32
    %c0_i32_0 = arith.constant 0 : i32
    return %c0_i32 : i32
  }
  func.func @transform_2(%arg0: i32) -> i32 {
    %c0_i32 = arith.constant 0 : i32
    %c0_i32_0 = arith.constant 0 : i32
    return %c0_i32 : i32
  }
  func.func @transform_3(%arg0: i32) -> i32 {
    %c0_i32 = arith.constant 0 : i32
    %c0_i32_0 = arith.constant 0 : i32
    return %c0_i32 : i32
  }
  func.func @transform_4(%arg0: i32) -> (i32, i32, i32) {
    %c0_i32 = arith.constant 0 : i32
    %c0_i32_0 = arith.constant 0 : i32
    %c0_i32_1 = arith.constant 0 : i32
    return %c0_i32, %arg0, %c0_i32_0 : i32, i32, i32
  }
  func.func @transform_5(%arg0: i32) -> (i32, i32) {
    %c0_i32 = arith.constant 0 : i32
    %c0_i32_0 = arith.constant 0 : i32
    return %arg0, %c0_i32 : i32, i32
  }
}

</mosaic_0001>

<bundles_post_ra>
// kernel: oze_vqvae_forward.1
= control target key start
LH: loop header
LB: loop body
LE: loop exit
PB: predicated region body
PF: predicated region fallthrough
CT: control target
= control target key end

     0   :  { %10 = vsyncpa [#allocation3], 0  ;;  %s1314_s0 = inlined_call_operand.vmem [shape: f32[16], index: 0, kind: input, shape index: {}]   ;;  %s1315_s1 = inlined_call_operand.vmem [shape: f32[16], index: 1, kind: input, shape index: {}]   ;;  %s1316_s2 = inlined_call_operand.vmem [shape: f32[16], index: 2, kind: input, shape index: {}]   ;;  %s1317_s3 = inlined_call_operand.vmem [shape: f32[16], index: 3, kind: input, shape index: {}]   ;;  %s1318_s4 = inlined_call_operand.vmem [shape: f32[2,32,128], index: 4, kind: input, shape index: {}]   ;;  %s1319_s5 = inlined_call_operand.vmem [shape: f32[32,128], index: 5, kind: output, shape index: {}]  }
   0x1   :  { %11 = vsyncpa [#allocation5], 0  ;;  %s29_s20 = sshll.u32 %s1315_s1, 4  ;;  %s30_s20 = int_to_ptr.vmem [resolvable:$true] %s29_s20 }
   0x2   :  { %12 = vsyncpa [#allocation8], 0  ;;  %s19_s23 = sshll.u32 %s1314_s0, 4  ;;  %s722_s24 = scalar_lea.vmem %s30_s20, 16  ;;  %s20_s23 = int_to_ptr.vmem [resolvable:$true] %s19_s23 }
   0x3   :  { %p723_p0 = scmp.ne.s32.totalorder %s30_s20, %s722_s24  ;;  %p727_p1 = scmp.lt.s32.totalorder %s30_s20, %s30_s20 }
   0x4   :  { %p728_p2 = scmp.lt.s32.totalorder %s722_s24, %s722_s24 }
   0x6   :  { %p729_p3 = por %p728_p2, %p727_p1 }
   0x8   :  { %p730_p4 = pnand %p729_p3, %p723_p0 }
   0xa   :  { %733 = shalt.err (!%p730_p4)
}
   0xb   :  { %s776_s25 = smov [#allocation4]   ;;  %s734_s26 = scalar_lea.vmem %s20_s23, 16 }
   0xc   :  { %32 = dma.vmem_to_smem %s30_s20, 16, %s776_s25, [#allocation5]  }
   0xd   :  { %p735_p5 = scmp.ne.s32.totalorder %s20_s23, %s734_s26  ;;  %p739_p6 = scmp.lt.s32.totalorder %s20_s23, %s20_s23 }
   0xe   :  { %p740_p7 = scmp.lt.s32.totalorder %s734_s26, %s734_s26 }
  0x10   :  { %p741_p8 = por %p740_p7, %p739_p6 }
  0x12   :  { %p742_p9 = pnand %p741_p8, %p735_p5 }
  0x14   :  { %745 = shalt.err (!%p742_p9)
}
  0x15   :  { %s777_s1 = smov [#allocation2]   ;;  %s39_s28 = sshll.u32 %s1316_s2, 4  ;;  %s40_s28 = int_to_ptr.vmem [resolvable:$true] %s39_s28 }
  0x16   :  { %22 = dma.vmem_to_smem %s20_s23, 16, %s777_s1, [#allocation3]  }
  0x17   :  { %s49_s6 = sshll.u32 %s1317_s3, 4  ;;  %s746_s7 = scalar_lea.vmem %s40_s28, 16  ;;  %s50_s6 = int_to_ptr.vmem [resolvable:$true] %s49_s6 }
  0x18   :  { %p747_p10 = scmp.ne.s32.totalorder %s40_s28, %s746_s7  ;;  %p751_p11 = scmp.lt.s32.totalorder %s40_s28, %s40_s28 }
  0x19   :  { %p752_p12 = scmp.lt.s32.totalorder %s746_s7, %s746_s7 }
  0x1b   :  { %p753_p13 = por %p752_p12, %p751_p11 }
  0x1d   :  { %p754_p0 = pnand %p753_p13, %p747_p10 }
  0x1f   :  { %757 = shalt.err (!%p754_p0)
}
  0x20   :  { %s778_s8 = smov [#allocation6]   ;;  %s758_s9 = scalar_lea.vmem %s50_s6, 16 }
  0x21   :  { %42 = dma.vmem_to_smem %s40_s28, 16, %s778_s8, [#allocation5]  }
  0x22   :  { %p759_p1 = scmp.ne.s32.totalorder %s50_s6, %s758_s9  ;;  %p763_p2 = scmp.lt.s32.totalorder %s50_s6, %s50_s6 }
  0x23   :  { %p764_p3 = scmp.lt.s32.totalorder %s758_s9, %s758_s9 }
  0x25   :  { %p765_p4 = por %p764_p3, %p763_p2 }
  0x27   :  { %p766_p5 = pnand %p765_p4, %p759_p1 }
  0x29   :  { %769 = shalt.err (!%p766_p5)
}
  0x2a   :  { %s779_s2 = smov [#allocation7]  }
  0x2b   :  { %52 = dma.vmem_to_smem %s50_s6, 16, %s779_s2, [#allocation8]  }
  0x2c   :  { %770 = dma.done.wait [#allocation3], 16  }
  0x2d   :  { %771 = vsyncadd [#allocation3], 4294967280 }
  0x2e   :  { %772 = dma.done.wait [#allocation5], 32  }
  0x2f   :  { %773 = vsyncadd [#allocation5], 4294967264 }
  0x30   :  { %774 = dma.done.wait [#allocation8], 16  }
  0x31   :  { %775 = vsyncadd [#allocation8], 4294967280 }
  0x32   :  { %67 = sfence }
  0x33   :  { %s68_s3 = sld [smem:[#allocation2]]  ;;  %s650_s10 = sld [smem:[#allocation2 + $0x1]]  ;;  %v825_v0 = vld [vmem:[%s1318_s4] sm:$0xff]  ;;  %v830_v1 = vld [vmem:[%s1318_s4 + $0x8] sm:$0xff]  ;;  %v835_v2 = vld [vmem:[%s1318_s4 + $0x10] sm:$0xff] }
  0x34   :  { %s651_s11 = sld [smem:[#allocation2 + $0x2]]  ;;  %s652_s12 = sld [smem:[#allocation2 + $0x3]]  ;;  %v840_v3 = vld [vmem:[%s1318_s4 + $0x18] sm:$0xff]  ;;  %v877_v22 = vld [vmem:[%s1318_s4 + $0x20] sm:$0xff]  ;;  %v894_v27 = vld [vmem:[%s1318_s4 + $0x28] sm:$0xff] }
  0x35   :  { %s653_s13 = sld [smem:[#allocation2 + $0x4]]  ;;  %s654_s14 = sld [smem:[#allocation2 + $0x5]]  ;;  %v899_v28 = vld [vmem:[%s1318_s4 + $0x30] sm:$0xff]  ;;  %v904_v29 = vld [vmem:[%s1318_s4 + $0x38] sm:$0xff] }
  0x36   :  { %s842_s23 = sld [smem:[#allocation2 + $0x6]]  ;;  %s844_s24 = sld [smem:[#allocation2 + $0x7]] }
  0x37   :  { %s850_s25 = sld [smem:[#allocation4]]  ;;  %s852_s26 = sld [smem:[#allocation4 + $0x1]] }
  0x38   :  { %s858_s1 = sld [smem:[#allocation4 + $0x2]]  ;;  %s860_s0 = sld [smem:[#allocation4 + $0x3]] }
  0x39   :  { %v142_v4 = vstv %s68_s3  ;;  %v162_v5 = vstv %s650_s10  ;;  %s870_s27 = sld [smem:[#allocation4 + $0x4]]  ;;  %s872_s28 = sld [smem:[#allocation4 + $0x5]] }
  0x3a   :  { %v143_v6 = vmul.f32 %v142_v4, %v825_v0  ;;  %v144_v7 = vmul.f32 %v142_v4, %v830_v1  ;;  %v145_v8 = vmul.f32 %v142_v4, %v835_v2  ;;  %v146_v9 = vmul.f32 %v142_v4, %v840_v3  ;;  %s100_s10 = sld [smem:[#allocation6]]  ;;  %s695_s15 = sld [smem:[#allocation7 + $0x1]] }
  0x3b   :  { %v163_v10 = vmul.f32 %v162_v5, %v825_v0  ;;  %v164_v11 = vmul.f32 %v162_v5, %v830_v1  ;;  %v165_v12 = vmul.f32 %v162_v5, %v835_v2  ;;  %v166_v13 = vmul.f32 %v162_v5, %v840_v3  ;;  %s966_s16 = sld [smem:[#allocation7 + $0x2]]  ;;  %s976_s17 = sld [smem:[#allocation7 + $0x3]] }
  0x3c   :  { %v194_v14 = vstv %s651_s11  ;;  %v226_v15 = vstv %s652_s12  ;;  %v258_v16 = vstv %s653_s13  ;;  %v290_v17 = vstv %s654_s14  ;;  %s680_s11 = sld [smem:[#allocation6 + $0x1]]  ;;  %s946_s12 = sld [smem:[#allocation6 + $0x2]] }
  0x3d   :  { %v195_v18 = vmul.f32 %v194_v14, %v825_v0  ;;  %v196_v19 = vmul.f32 %v194_v14, %v830_v1  ;;  %v865_v20 = vmul.f32 %v194_v14, %v835_v2  ;;  %v868_v21 = vmul.f32 %v194_v14, %v840_v3  ;;  %s960_s13 = sld [smem:[#allocation6 + $0x3]]  ;;  %s116_s14 = sld [smem:[#allocation7]] }
  0x3e   :  { %v880_v23 = vmul.f32 %v226_v15, %v825_v0  ;;  %v883_v24 = vmul.f32 %v226_v15, %v830_v1  ;;  %v886_v25 = vmul.f32 %v226_v15, %v835_v2  ;;  %v889_v26 = vmul.f32 %v226_v15, %v840_v3  ;;  %s986_s18 = sld [smem:[#allocation6 + $0x4]]  ;;  %s1000_s20 = sld [smem:[#allocation6 + $0x5]] }
  0x3f   :  { %v907_v30 = vmul.f32 %v258_v16, %v825_v0  ;;  %v910_v31 = vmul.f32 %v258_v16, %v830_v1  ;;  %v913_v32 = vmul.f32 %v258_v16, %v835_v2  ;;  %v916_v33 = vmul.f32 %v258_v16, %v840_v3  ;;  %s988_s19 = sld [smem:[#allocation7 + $0x4]]  ;;  %s1002_s21 = sld [smem:[#allocation7 + $0x5]] }
  0x40   :  { %v919_v34 = vmul.f32 %v290_v17, %v825_v0  ;;  %v922_v35 = vmul.f32 %v290_v17, %v830_v1  ;;  %v925_v36 = vmul.f32 %v290_v17, %v835_v2  ;;  %v928_v37 = vmul.f32 %v290_v17, %v840_v3  ;;  %s1024_s22 = sld [smem:[#allocation4 + $0x6]]  ;;  %s1074_s29 = sld [smem:[#allocation4 + $0x9]] }
  0x41   :  { %v147_v38 = vstv %s850_s25  ;;  %v167_v39 = vstv %s852_s26  ;;  %v933_v40 = vstv %s842_s23  ;;  %v936_v41 = vstv %s844_s24  ;;  %s1028_s23 = sld [smem:[#allocation6 + $0x6]]  ;;  %s1032_s25 = sld [smem:[#allocation4 + $0x7]] }
  0x42   :  { %v148_v42 = vmul.f32 %v877_v22, %v147_v38  ;;  %v149_v43 = vmul.f32 %v894_v27, %v147_v38  ;;  %v150_v44 = vmul.f32 %v899_v28, %v147_v38  ;;  %v151_v45 = vmul.f32 %v904_v29, %v147_v38  ;;  %s1030_s24 = sld [smem:[#allocation7 + $0x6]]  ;;  %s1053_s26 = sld [smem:[#allocation2 + $0x8]] }
  0x43   :  { %v168_v46 = vmul.f32 %v877_v22, %v167_v39  ;;  %v169_v47 = vmul.f32 %v894_v27, %v167_v39  ;;  %v170_v48 = vmul.f32 %v899_v28, %v167_v39  ;;  %v171_v49 = vmul.f32 %v904_v29, %v167_v39  ;;  %s1076_s30 = sld [smem:[#allocation6 + $0x8]]  ;;  %s1098_s7 = sld [smem:[#allocation2 + $0xa]] }
  0x44   :  { %v152_v50 = vadd.f32 %v148_v42, %v143_v6  ;;  %v153_v51 = vadd.f32 %v149_v43, %v144_v7  ;;  %v154_v52 = vadd.f32 %v150_v44, %v145_v8  ;;  %v155_v53 = vadd.f32 %v151_v45, %v146_v9  ;;  %s1078_s6 = sld [smem:[#allocation7 + $0x8]]  ;;  %s1100_s8 = sld [smem:[#allocation6 + $0x9]] }
  0x45   :  { %v172_v54 = vadd.f32 %v168_v46, %v163_v10  ;;  %v173_v55 = vadd.f32 %v169_v47, %v164_v11  ;;  %v174_v56 = vadd.f32 %v170_v48, %v165_v12  ;;  %v175_v57 = vadd.f32 %v171_v49, %v166_v13  ;;  %s1106_s9 = sld [smem:[#allocation4 + $0xa]]  ;;  %s1108_s2 = sld [smem:[#allocation7 + $0x9]] }
  0x46   :  { %v199_v58 = vstv %s858_s1  ;;  %v231_v59 = vstv %s860_s0  ;;  %v951_v60 = vstv %s870_s27  ;;  %v954_v61 = vstv %s872_s28  ;;  %s1055_s1 = sld [smem:[#allocation6 + $0x7]]  ;;  %s1064_s0 = sld [smem:[#allocation4 + $0x8]] }
  0x47   :  { %v200_v62 = vmul.f32 %v877_v22, %v199_v58  ;;  %v201_v63 = vmul.f32 %v894_v27, %v199_v58  ;;  %v202_v4 = vmul.f32 %v899_v28, %v199_v58  ;;  %v203_v5 = vmul.f32 %v904_v29, %v199_v58  ;;  %s1066_s27 = sld [smem:[#allocation7 + $0x7]]  ;;  %s1072_s28 = sld [smem:[#allocation2 + $0x9]] }
  0x48   :  { %v232_v6 = vmul.f32 %v877_v22, %v231_v59  ;;  %v233_v7 = vmul.f32 %v894_v27, %v231_v59  ;;  %v234_v8 = vmul.f32 %v899_v28, %v231_v59  ;;  %v235_v9 = vmul.f32 %v904_v29, %v231_v59  ;;  %s1116_s3 = sld [smem:[#allocation2 + $0xb]] }
  0x49   :  { %v156_v10 = vstv %s100_s10  ;;  %v176_v11 = vstv %s680_s11  ;;  %v204_v12 = vadd.f32 %v200_v62, %v195_v18  ;;  %v205_v13 = vadd.f32 %v201_v63, %v196_v19  ;;  %s1118_s10 = sld [smem:[#allocation4 + $0xb]]  ;;  %s1126_s11 = sld [smem:[#allocation6 + $0xa]] }
  0x4a   :  { %v157_v14 = vadd.f32 %v156_v10, %v152_v50  ;;  %v158_v15 = vadd.f32 %v156_v10, %v153_v51  ;;  %v159_v16 = vadd.f32 %v156_v10, %v154_v52  ;;  %v160_v17 = vadd.f32 %v156_v10, %v155_v53 }
  0x4b   :  { %v177_v38 = vadd.f32 %v176_v11, %v172_v54  ;;  %v178_v39 = vadd.f32 %v176_v11, %v173_v55  ;;  %v179_v42 = vadd.f32 %v176_v11, %v174_v56  ;;  %v180_v43 = vadd.f32 %v176_v11, %v175_v57 }
  0x4c   :  { %v206_v44 = vadd.f32 %v202_v4, %v865_v20  ;;  %v207_v45 = vadd.f32 %v203_v5, %v868_v21  ;;  %v208_v46 = vstv %s946_s12  ;;  %v236_v18 = vadd.f32 %v232_v6, %v880_v23  ;;  %s1128_s12 = sld [smem:[#allocation7 + $0xa]] }
  0x4d   :  { %vm181_vm0 = vcmp.lt.f32.partialorder %v177_v38, %v157_v14  ;;  %vm182_vm1 = vcmp.lt.f32.partialorder %v178_v39, %v158_v15  ;;  %vm183_vm2 = vcmp.lt.f32.partialorder %v179_v42, %v159_v16  ;;  %vm184_vm3 = vcmp.lt.f32.partialorder %v180_v43, %v160_v17 }
  0x4e   :  { %v185_v19 = vsel %vm181_vm0, %v177_v38, %v157_v14  ;;  %v186_v47 = vsel %vm182_vm1, %v178_v39, %v158_v15  ;;  %v187_v48 = vsel %vm183_vm2, %v179_v42, %v159_v16  ;;  %v188_v49 = vsel %vm184_vm3, %v180_v43, %v160_v17 }
  0x4f   :  { %v209_v20 = vadd.f32 %v208_v46, %v204_v12  ;;  %v210_v21 = vadd.f32 %v208_v46, %v205_v13  ;;  %v211_v50 = vadd.f32 %v208_v46, %v206_v44  ;;  %v212_v51 = vadd.f32 %v208_v46, %v207_v45 }
  0x50   :  { %v237_v23 = vadd.f32 %v233_v7, %v883_v24  ;;  %v238_v52 = vadd.f32 %v234_v8, %v886_v25  ;;  %v239_v53 = vadd.f32 %v235_v9, %v889_v26  ;;  %v240_v54 = vstv %s960_s13  ;;  %s1156_s13 = sld [smem:[#allocation2 + $0xc]] }
  0x51   :  { %v161_v55 = vstv %s116_s14  ;;  %v189_v56 = vstv %s695_s15  ;;  %vm213_vm4 = vcmp.lt.f32.partialorder %v209_v20, %v185_v19  ;;  %vm214_vm5 = vcmp.lt.f32.partialorder %v210_v21, %v186_v47  ;;  %s1158_s14 = sld [smem:[#allocation6 + $0xb]]  ;;  %s1164_s15 = sld [smem:[#allocation4 + $0xc]] }
  0x52   :  { %v190_v57 = vsel %vm181_vm0, %v189_v56, %v161_v55  ;;  %v191_v58 = vsel %vm182_vm1, %v189_v56, %v161_v55  ;;  %v192_v59 = vsel %vm183_vm2, %v189_v56, %v161_v55  ;;  %v193_v62 = vsel %vm184_vm3, %v189_v56, %v161_v55 }
  0x53   :  { %vm215_vm6 = vcmp.lt.f32.partialorder %v211_v50, %v187_v48  ;;  %vm216_vm7 = vcmp.lt.f32.partialorder %v212_v51, %v188_v49  ;;  %v217_v24 = vsel %vm213_vm4, %v209_v20, %v185_v19  ;;  %v218_v25 = vsel %vm214_vm5, %v210_v21, %v186_v47 }
  0x54   :  { %v219_v26 = vsel %vm215_vm6, %v211_v50, %v187_v48  ;;  %v220_v63 = vsel %vm216_vm7, %v212_v51, %v188_v49  ;;  %v221_v4 = vstv %s966_s16  ;;  %v241_v5 = vadd.f32 %v240_v54, %v236_v18  ;;  %s1166_s16 = sld [smem:[#allocation7 + $0xb]] }
  0x55   :  { %v222_v6 = vsel %vm213_vm4, %v221_v4, %v190_v57  ;;  %v223_v7 = vsel %vm214_vm5, %v221_v4, %v191_v58  ;;  %v224_v8 = vsel %vm215_vm6, %v221_v4, %v192_v59  ;;  %v225_v9 = vsel %vm216_vm7, %v221_v4, %v193_v62 }
  0x56   :  { %v242_v10 = vadd.f32 %v240_v54, %v237_v23  ;;  %v243_v11 = vadd.f32 %v240_v54, %v238_v52  ;;  %v244_v12 = vadd.f32 %v240_v54, %v239_v53  ;;  %vm245_vm8 = vcmp.lt.f32.partialorder %v241_v5, %v217_v24 }
  0x57   :  { %v249_v13 = vsel %vm245_vm8, %v241_v5, %v217_v24  ;;  %v253_v14 = vstv %s976_s17  ;;  %v264_v15 = vmul.f32 %v877_v22, %v951_v60  ;;  %v265_v16 = vmul.f32 %v894_v27, %v951_v60  ;;  %s1176_s17 = sld [smem:[#allocation2 + $0xd]] }
  0x58   :  { %vm246_vm9 = vcmp.lt.f32.partialorder %v242_v10, %v218_v25  ;;  %vm247_vm10 = vcmp.lt.f32.partialorder %v243_v11, %v219_v26  ;;  %vm248_vm11 = vcmp.lt.f32.partialorder %v244_v12, %v220_v63  ;;  %v254_v17 = vsel %vm245_vm8, %v253_v14, %v222_v6 }
  0x59   :  { %v250_v38 = vsel %vm246_vm9, %v242_v10, %v218_v25  ;;  %v251_v39 = vsel %vm247_vm10, %v243_v11, %v219_v26  ;;  %v252_v42 = vsel %vm248_vm11, %v244_v12, %v220_v63  ;;  %v255_v43 = vsel %vm246_vm9, %v253_v14, %v223_v7 }
  0x5a   :  { %v256_v44 = vsel %vm247_vm10, %v253_v14, %v224_v8  ;;  %v257_v45 = vsel %vm248_vm11, %v253_v14, %v225_v9  ;;  %v266_v46 = vmul.f32 %v899_v28, %v951_v60  ;;  %v267_v18 = vmul.f32 %v904_v29, %v951_v60 }
  0x5b   :  { %v268_v19 = vadd.f32 %v264_v15, %v907_v30  ;;  %v269_v47 = vadd.f32 %v265_v16, %v910_v31  ;;  %v272_v48 = vstv %s986_s18  ;;  %v285_v49 = vstv %s988_s19  ;;  %s1178_s18 = sld [smem:[#allocation4 + $0xd]]  ;;  %s1186_s19 = sld [smem:[#allocation6 + $0xc]] }
  0x5c   :  { %v270_v20 = vadd.f32 %v266_v46, %v913_v32  ;;  %v271_v21 = vadd.f32 %v267_v18, %v916_v33  ;;  %v296_v50 = vmul.f32 %v877_v22, %v954_v61  ;;  %v297_v51 = vmul.f32 %v894_v27, %v954_v61 }
  0x5d   :  { %v273_v23 = vadd.f32 %v272_v48, %v268_v19  ;;  %v274_v52 = vadd.f32 %v272_v48, %v269_v47  ;;  %v298_v60 = vmul.f32 %v899_v28, %v954_v61  ;;  %v299_v30 = vmul.f32 %v904_v29, %v954_v61 }
  0x5e   :  { %v275_v31 = vadd.f32 %v272_v48, %v270_v20  ;;  %v276_v53 = vadd.f32 %v272_v48, %v271_v21  ;;  %v300_v32 = vadd.f32 %v296_v50, %v919_v34  ;;  %v301_v33 = vadd.f32 %v297_v51, %v922_v35 }
  0x5f   :  { %vm277_vm12 = vcmp.lt.f32.partialorder %v273_v23, %v249_v13  ;;  %vm278_vm13 = vcmp.lt.f32.partialorder %v274_v52, %v250_v38  ;;  %v302_v54 = vadd.f32 %v298_v60, %v925_v36  ;;  %v303_v55 = vadd.f32 %v299_v30, %v928_v37 }
  0x60   :  { %vm279_vm14 = vcmp.lt.f32.partialorder %v275_v31, %v251_v39  ;;  %vm280_vm15 = vcmp.lt.f32.partialorder %v276_v53, %v252_v42  ;;  %v281_v61 = vsel %vm277_vm12, %v273_v23, %v249_v13  ;;  %v282_v34 = vsel %vm278_vm13, %v274_v52, %v250_v38 }
  0x61   :  { %v283_v56 = vsel %vm279_vm14, %v275_v31, %v251_v39  ;;  %v284_v35 = vsel %vm280_vm15, %v276_v53, %v252_v42  ;;  %v286_v57 = vsel %vm277_vm12, %v285_v49, %v254_v17  ;;  %v287_v58 = vsel %vm278_vm13, %v285_v49, %v255_v43 }
  0x62   :  { %v288_v59 = vsel %vm279_vm14, %v285_v49, %v256_v44  ;;  %v289_v62 = vsel %vm280_vm15, %v285_v49, %v257_v45  ;;  %v304_v36 = vstv %s1000_s20  ;;  %v317_v24 = vstv %s1002_s21  ;;  %s1188_s20 = sld [smem:[#allocation7 + $0xc]]  ;;  %s1216_s21 = sld [smem:[#allocation2 + $0xe]] }
  0x63   :  { %v305_v25 = vadd.f32 %v304_v36, %v300_v32  ;;  %v306_v37 = vadd.f32 %v304_v36, %v301_v33  ;;  %v307_v26 = vadd.f32 %v304_v36, %v302_v54  ;;  %v308_v63 = vadd.f32 %v304_v36, %v303_v55 }
  0x64   :  { %v323_v4 = vmul.f32 %v933_v40, %v825_v0  ;;  %v324_v5 = vmul.f32 %v933_v40, %v830_v1  ;;  %v325_v6 = vmul.f32 %v933_v40, %v835_v2  ;;  %v326_v7 = vmul.f32 %v933_v40, %v840_v3 }
  0x65   :  { %vm309_vm0 = vcmp.lt.f32.partialorder %v305_v25, %v281_v61  ;;  %vm310_vm1 = vcmp.lt.f32.partialorder %v306_v37, %v282_v34  ;;  %vm311_vm2 = vcmp.lt.f32.partialorder %v307_v26, %v283_v56  ;;  %vm312_vm3 = vcmp.lt.f32.partialorder %v308_v63, %v284_v35 }
  0x66   :  { %v313_v8 = vsel %vm309_vm0, %v305_v25, %v281_v61  ;;  %v314_v9 = vsel %vm310_vm1, %v306_v37, %v282_v34  ;;  %v315_v10 = vsel %vm311_vm2, %v307_v26, %v283_v56  ;;  %v316_v11 = vsel %vm312_vm3, %v308_v63, %v284_v35 }
  0x67   :  { %v318_v12 = vsel %vm309_vm0, %v317_v24, %v286_v57  ;;  %v319_v13 = vsel %vm310_vm1, %v317_v24, %v287_v58  ;;  %v320_v14 = vsel %vm311_vm2, %v317_v24, %v288_v59  ;;  %v321_v15 = vsel %vm312_vm3, %v317_v24, %v289_v62 }
  0x68   :  { %v327_v16 = vstv %s1024_s22  ;;  %v336_v17 = vstv %s1028_s23  ;;  %v349_v38 = vstv %s1030_s24  ;;  %v355_v39 = vmul.f32 %v936_v41, %v825_v0  ;;  %s1218_s22 = sld [smem:[#allocation6 + $0xd]]  ;;  %s1224_s23 = sld [smem:[#allocation4 + $0xe]] }
  0x69   :  { %v328_v40 = vmul.f32 %v877_v22, %v327_v16  ;;  %v329_v42 = vmul.f32 %v894_v27, %v327_v16  ;;  %v330_v43 = vmul.f32 %v899_v28, %v327_v16  ;;  %v331_v44 = vmul.f32 %v904_v29, %v327_v16  ;;  %s1226_s24 = sld [smem:[#allocation7 + $0xd]] }
  0x6a   :  { %v356_v45 = vmul.f32 %v936_v41, %v830_v1  ;;  %v357_v46 = vmul.f32 %v936_v41, %v835_v2  ;;  %v358_v18 = vmul.f32 %v936_v41, %v840_v3  ;;  %v359_v19 = vstv %s1032_s25  ;;  %s1236_s25 = sld [smem:[#allocation2 + $0xf]] }
  0x6b   :  { %v332_v47 = vadd.f32 %v328_v40, %v323_v4  ;;  %v333_v48 = vadd.f32 %v329_v42, %v324_v5  ;;  %v334_v49 = vadd.f32 %v330_v43, %v325_v6  ;;  %v335_v20 = vadd.f32 %v331_v44, %v326_v7 }
  0x6c   :  { %v360_v21 = vmul.f32 %v877_v22, %v359_v19  ;;  %v361_v50 = vmul.f32 %v894_v27, %v359_v19  ;;  %v362_v51 = vmul.f32 %v899_v28, %v359_v19  ;;  %v363_v23 = vmul.f32 %v904_v29, %v359_v19 }
  0x6d   :  { %v337_v52 = vadd.f32 %v336_v17, %v332_v47  ;;  %v338_v60 = vadd.f32 %v336_v17, %v333_v48  ;;  %v339_v41 = vadd.f32 %v336_v17, %v334_v49  ;;  %v340_v30 = vadd.f32 %v336_v17, %v335_v20 }
  0x6e   :  { %v364_v31 = vadd.f32 %v360_v21, %v355_v39  ;;  %v365_v53 = vadd.f32 %v361_v50, %v356_v45  ;;  %v366_v32 = vadd.f32 %v362_v51, %v357_v46  ;;  %v367_v33 = vadd.f32 %v363_v23, %v358_v18 }
  0x6f   :  { %vm341_vm4 = vcmp.lt.f32.partialorder %v337_v52, %v313_v8  ;;  %vm342_vm5 = vcmp.lt.f32.partialorder %v338_v60, %v314_v9  ;;  %vm343_vm6 = vcmp.lt.f32.partialorder %v339_v41, %v315_v10  ;;  %vm344_vm7 = vcmp.lt.f32.partialorder %v340_v30, %v316_v11 }
  0x70   :  { %v345_v54 = vsel %vm341_vm4, %v337_v52, %v313_v8  ;;  %v346_v55 = vsel %vm342_vm5, %v338_v60, %v314_v9  ;;  %v347_v61 = vsel %vm343_vm6, %v339_v41, %v315_v10  ;;  %v348_v34 = vsel %vm344_vm7, %v340_v30, %v316_v11 }
  0x71   :  { %v350_v56 = vsel %vm341_vm4, %v349_v38, %v318_v12  ;;  %v351_v35 = vsel %vm342_vm5, %v349_v38, %v319_v13  ;;  %v352_v57 = vsel %vm343_vm6, %v349_v38, %v320_v14  ;;  %v353_v58 = vsel %vm344_vm7, %v349_v38, %v321_v15 }
  0x72   :  { %v368_v59 = vstv %s1055_s1  ;;  %v386_v62 = vstv %s1053_s26  ;;  %v381_v26 = vstv %s1066_s27  ;;  %v391_v5 = vstv %s1064_s0  ;;  %s1238_s26 = sld [smem:[#allocation4 + $0xf]]  ;;  %s1246_s1 = sld [smem:[#allocation6 + $0xe]] }
  0x73   :  { %v369_v36 = vadd.f32 %v368_v59, %v364_v31  ;;  %v370_v24 = vadd.f32 %v368_v59, %v365_v53  ;;  %v371_v25 = vadd.f32 %v368_v59, %v366_v32  ;;  %v372_v37 = vadd.f32 %v368_v59, %v367_v33  ;;  %s1248_s0 = sld [smem:[#allocation7 + $0xe]]  ;;  %s1276_s27 = sld [smem:[#allocation6 + $0xf]] }
  0x74   :  { %v387_v63 = vmul.f32 %v386_v62, %v825_v0  ;;  %v388_v4 = vmul.f32 %v386_v62, %v830_v1  ;;  %v389_v8 = vmul.f32 %v386_v62, %v835_v2  ;;  %v390_v9 = vmul.f32 %v386_v62, %v840_v3 }
  0x75   :  { %vm373_vm8 = vcmp.lt.f32.partialorder %v369_v36, %v345_v54  ;;  %vm374_vm9 = vcmp.lt.f32.partialorder %v370_v24, %v346_v55  ;;  %vm375_vm10 = vcmp.lt.f32.partialorder %v371_v25, %v347_v61  ;;  %vm376_vm11 = vcmp.lt.f32.partialorder %v372_v37, %v348_v34 }
  0x76   :  { %v377_v6 = vsel %vm373_vm8, %v369_v36, %v345_v54  ;;  %v378_v7 = vsel %vm374_vm9, %v370_v24, %v346_v55  ;;  %v379_v10 = vsel %vm375_vm10, %v371_v25, %v347_v61  ;;  %v380_v11 = vsel %vm376_vm11, %v372_v37, %v348_v34 }
  0x77   :  { %v382_v12 = vsel %vm373_vm8, %v381_v26, %v350_v56  ;;  %v383_v13 = vsel %vm374_vm9, %v381_v26, %v351_v35  ;;  %v392_v14 = vmul.f32 %v877_v22, %v391_v5  ;;  %v393_v15 = vmul.f32 %v894_v27, %v391_v5 }
  0x78   :  { %v394_v16 = vmul.f32 %v899_v28, %v391_v5  ;;  %v395_v17 = vmul.f32 %v904_v29, %v391_v5  ;;  %v400_v38 = vstv %s1076_s30  ;;  %v413_v39 = vstv %s1078_s6 }
  0x79   :  { %v418_v40 = vstv %s1072_s28  ;;  %v423_v42 = vstv %s1074_s29  ;;  %v396_v43 = vadd.f32 %v392_v14, %v387_v63  ;;  %v397_v44 = vadd.f32 %v393_v15, %v388_v4  ;;  %s1278_s28 = sld [smem:[#allocation7 + $0xf]] }
  0x7a   :  { %v398_v45 = vadd.f32 %v394_v16, %v389_v8  ;;  %v399_v46 = vadd.f32 %v395_v17, %v390_v9  ;;  %v419_v18 = vmul.f32 %v418_v40, %v825_v0  ;;  %v420_v19 = vmul.f32 %v418_v40, %v830_v1 }
  0x7b   :  { %v421_v47 = vmul.f32 %v418_v40, %v835_v2  ;;  %v422_v48 = vmul.f32 %v418_v40, %v840_v3  ;;  %v401_v49 = vadd.f32 %v400_v38, %v396_v43  ;;  %v402_v20 = vadd.f32 %v400_v38, %v397_v44 }
  0x7c   :  { %v403_v21 = vadd.f32 %v400_v38, %v398_v45  ;;  %v404_v50 = vadd.f32 %v400_v38, %v399_v46  ;;  %v424_v51 = vmul.f32 %v877_v22, %v423_v42  ;;  %v425_v23 = vmul.f32 %v894_v27, %v423_v42 }
  0x7d   :  { %v426_v52 = vmul.f32 %v899_v28, %v423_v42  ;;  %v427_v60 = vmul.f32 %v904_v29, %v423_v42  ;;  %vm405_vm12 = vcmp.lt.f32.partialorder %v401_v49, %v377_v6  ;;  %vm406_vm13 = vcmp.lt.f32.partialorder %v402_v20, %v378_v7 }
  0x7e   :  { %vm407_vm14 = vcmp.lt.f32.partialorder %v403_v21, %v379_v10  ;;  %vm408_vm15 = vcmp.lt.f32.partialorder %v404_v50, %v380_v11  ;;  %v384_v41 = vsel %vm375_vm10, %v381_v26, %v352_v57  ;;  %v385_v30 = vsel %vm376_vm11, %v381_v26, %v353_v58 }
  0x7f   :  { %v409_v31 = vsel %vm405_vm12, %v401_v49, %v377_v6  ;;  %v410_v53 = vsel %vm406_vm13, %v402_v20, %v378_v7  ;;  %v1121_v32 = vsel %vm407_vm14, %v403_v21, %v379_v10  ;;  %v1124_v33 = vsel %vm408_vm15, %v404_v50, %v380_v11 }
  0x80   :  { %v414_v54 = vsel %vm405_vm12, %v413_v39, %v382_v12  ;;  %v415_v55 = vsel %vm406_vm13, %v413_v39, %v383_v13  ;;  %v428_v61 = vadd.f32 %v424_v51, %v419_v18  ;;  %v429_v34 = vadd.f32 %v425_v23, %v420_v19 }
  0x81   :  { %v430_v56 = vadd.f32 %v426_v52, %v421_v47  ;;  %v431_v35 = vadd.f32 %v427_v60, %v422_v48  ;;  %v416_v57 = vsel %vm407_vm14, %v413_v39, %v384_v41  ;;  %v417_v58 = vsel %vm408_vm15, %v413_v39, %v385_v30 }
  0x82   :  { %v432_v59 = vstv %s1100_s8  ;;  %v450_v62 = vstv %s1098_s7  ;;  %v445_v26 = vstv %s1108_s2  ;;  %v455_v5 = vstv %s1106_s9 }
  0x83   :  { %v433_v36 = vadd.f32 %v432_v59, %v428_v61  ;;  %v434_v24 = vadd.f32 %v432_v59, %v429_v34  ;;  %v435_v25 = vadd.f32 %v432_v59, %v430_v56  ;;  %v436_v37 = vadd.f32 %v432_v59, %v431_v35 }
  0x84   :  { %v451_v63 = vmul.f32 %v450_v62, %v825_v0  ;;  %v452_v4 = vmul.f32 %v450_v62, %v830_v1  ;;  %v453_v8 = vmul.f32 %v450_v62, %v835_v2  ;;  %v454_v9 = vmul.f32 %v450_v62, %v840_v3 }
  0x85   :  { %vm437_vm0 = vcmp.lt.f32.partialorder %v433_v36, %v409_v31  ;;  %vm438_vm1 = vcmp.lt.f32.partialorder %v434_v24, %v410_v53  ;;  %vm439_vm2 = vcmp.lt.f32.partialorder %v435_v25, %v1121_v32  ;;  %vm440_vm3 = vcmp.lt.f32.partialorder %v436_v37, %v1124_v33 }
  0x86   :  { %v441_v6 = vsel %vm437_vm0, %v433_v36, %v409_v31  ;;  %v442_v7 = vsel %vm438_vm1, %v434_v24, %v410_v53  ;;  %v443_v10 = vsel %vm439_vm2, %v435_v25, %v1121_v32  ;;  %v444_v11 = vsel %vm440_vm3, %v436_v37, %v1124_v33 }
  0x87   :  { %v446_v12 = vsel %vm437_vm0, %v445_v26, %v414_v54  ;;  %v447_v13 = vsel %vm438_vm1, %v445_v26, %v415_v55  ;;  %v456_v14 = vmul.f32 %v877_v22, %v455_v5  ;;  %v457_v15 = vmul.f32 %v894_v27, %v455_v5 }
  0x88   :  { %v458_v16 = vmul.f32 %v899_v28, %v455_v5  ;;  %v459_v17 = vmul.f32 %v904_v29, %v455_v5  ;;  %v464_v38 = vstv %s1126_s11  ;;  %v477_v39 = vstv %s1128_s12 }
  0x89   :  { %v482_v40 = vstv %s1116_s3  ;;  %v487_v42 = vstv %s1118_s10  ;;  %v460_v43 = vadd.f32 %v456_v14, %v451_v63  ;;  %v461_v44 = vadd.f32 %v457_v15, %v452_v4 }
  0x8a   :  { %v462_v45 = vadd.f32 %v458_v16, %v453_v8  ;;  %v463_v46 = vadd.f32 %v459_v17, %v454_v9  ;;  %v483_v18 = vmul.f32 %v482_v40, %v825_v0  ;;  %v484_v19 = vmul.f32 %v482_v40, %v830_v1 }
  0x8b   :  { %v485_v47 = vmul.f32 %v482_v40, %v835_v2  ;;  %v486_v48 = vmul.f32 %v482_v40, %v840_v3  ;;  %v465_v49 = vadd.f32 %v464_v38, %v460_v43  ;;  %v466_v20 = vadd.f32 %v464_v38, %v461_v44 }
  0x8c   :  { %v467_v21 = vadd.f32 %v464_v38, %v462_v45  ;;  %v468_v50 = vadd.f32 %v464_v38, %v463_v46  ;;  %v488_v51 = vmul.f32 %v877_v22, %v487_v42  ;;  %v489_v23 = vmul.f32 %v894_v27, %v487_v42 }
  0x8d   :  { %v490_v52 = vmul.f32 %v899_v28, %v487_v42  ;;  %v491_v60 = vmul.f32 %v904_v29, %v487_v42  ;;  %vm469_vm4 = vcmp.lt.f32.partialorder %v465_v49, %v441_v6  ;;  %vm470_vm5 = vcmp.lt.f32.partialorder %v466_v20, %v442_v7 }
  0x8e   :  { %vm471_vm6 = vcmp.lt.f32.partialorder %v467_v21, %v443_v10  ;;  %vm472_vm7 = vcmp.lt.f32.partialorder %v468_v50, %v444_v11  ;;  %v448_v41 = vsel %vm439_vm2, %v445_v26, %v416_v57  ;;  %v449_v30 = vsel %vm440_vm3, %v445_v26, %v417_v58 }
  0x8f   :  { %v473_v31 = vsel %vm469_vm4, %v465_v49, %v441_v6  ;;  %v474_v53 = vsel %vm470_vm5, %v466_v20, %v442_v7  ;;  %v1181_v54 = vsel %vm471_vm6, %v467_v21, %v443_v10  ;;  %v1184_v55 = vsel %vm472_vm7, %v468_v50, %v444_v11 }
  0x90   :  { %v478_v61 = vsel %vm469_vm4, %v477_v39, %v446_v12  ;;  %v479_v32 = vsel %vm470_vm5, %v477_v39, %v447_v13  ;;  %v492_v33 = vadd.f32 %v488_v51, %v483_v18  ;;  %v493_v34 = vadd.f32 %v489_v23, %v484_v19 }
  0x91   :  { %v494_v56 = vadd.f32 %v490_v52, %v485_v47  ;;  %v495_v35 = vadd.f32 %v491_v60, %v486_v48  ;;  %v480_v57 = vsel %vm471_vm6, %v477_v39, %v448_v41  ;;  %v481_v58 = vsel %vm472_vm7, %v477_v39, %v449_v30 }
  0x92   :  { %v496_v59 = vstv %s1158_s14  ;;  %v514_v62 = vstv %s1156_s13  ;;  %v509_v26 = vstv %s1166_s16  ;;  %v519_v5 = vstv %s1164_s15 }
  0x93   :  { %v497_v36 = vadd.f32 %v496_v59, %v492_v33  ;;  %v498_v24 = vadd.f32 %v496_v59, %v493_v34  ;;  %v499_v25 = vadd.f32 %v496_v59, %v494_v56  ;;  %v500_v37 = vadd.f32 %v496_v59, %v495_v35 }
  0x94   :  { %v515_v63 = vmul.f32 %v514_v62, %v825_v0  ;;  %v516_v4 = vmul.f32 %v514_v62, %v830_v1  ;;  %v517_v8 = vmul.f32 %v514_v62, %v835_v2  ;;  %v518_v9 = vmul.f32 %v514_v62, %v840_v3 }
  0x95   :  { %vm501_vm8 = vcmp.lt.f32.partialorder %v497_v36, %v473_v31  ;;  %vm502_vm9 = vcmp.lt.f32.partialorder %v498_v24, %v474_v53  ;;  %vm503_vm10 = vcmp.lt.f32.partialorder %v499_v25, %v1181_v54  ;;  %vm504_vm11 = vcmp.lt.f32.partialorder %v500_v37, %v1184_v55 }
  0x96   :  { %v505_v6 = vsel %vm501_vm8, %v497_v36, %v473_v31  ;;  %v506_v7 = vsel %vm502_vm9, %v498_v24, %v474_v53  ;;  %v507_v10 = vsel %vm503_vm10, %v499_v25, %v1181_v54  ;;  %v508_v11 = vsel %vm504_vm11, %v500_v37, %v1184_v55 }
  0x97   :  { %v510_v12 = vsel %vm501_vm8, %v509_v26, %v478_v61  ;;  %v511_v13 = vsel %vm502_vm9, %v509_v26, %v479_v32  ;;  %v520_v14 = vmul.f32 %v877_v22, %v519_v5  ;;  %v521_v15 = vmul.f32 %v894_v27, %v519_v5 }
  0x98   :  { %v522_v16 = vmul.f32 %v899_v28, %v519_v5  ;;  %v523_v17 = vmul.f32 %v904_v29, %v519_v5  ;;  %v528_v38 = vstv %s1186_s19  ;;  %v541_v39 = vstv %s1188_s20 }
  0x99   :  { %v546_v40 = vstv %s1176_s17  ;;  %v551_v42 = vstv %s1178_s18  ;;  %v524_v43 = vadd.f32 %v520_v14, %v515_v63  ;;  %v525_v44 = vadd.f32 %v521_v15, %v516_v4 }
  0x9a   :  { %v526_v45 = vadd.f32 %v522_v16, %v517_v8  ;;  %v527_v46 = vadd.f32 %v523_v17, %v518_v9  ;;  %v547_v18 = vmul.f32 %v546_v40, %v825_v0  ;;  %v548_v19 = vmul.f32 %v546_v40, %v830_v1 }
  0x9b   :  { %v549_v47 = vmul.f32 %v546_v40, %v835_v2  ;;  %v550_v48 = vmul.f32 %v546_v40, %v840_v3  ;;  %v529_v49 = vadd.f32 %v528_v38, %v524_v43  ;;  %v530_v20 = vadd.f32 %v528_v38, %v525_v44  ;;  %v718_v43 = vld [vmem:[%s1318_s4] sm:$0xff] }
  0x9c   :  { %v531_v21 = vadd.f32 %v528_v38, %v526_v45  ;;  %v532_v50 = vadd.f32 %v528_v38, %v527_v46  ;;  %v552_v51 = vmul.f32 %v877_v22, %v551_v42  ;;  %v553_v23 = vmul.f32 %v894_v27, %v551_v42  ;;  %v719_v45 = vld [vmem:[%s1318_s4 + $0x8] sm:$0xff] }
  0x9d   :  { %v554_v52 = vmul.f32 %v899_v28, %v551_v42  ;;  %v555_v60 = vmul.f32 %v904_v29, %v551_v42  ;;  %vm533_vm12 = vcmp.lt.f32.partialorder %v529_v49, %v505_v6  ;;  %vm534_vm13 = vcmp.lt.f32.partialorder %v530_v20, %v506_v7 }
  0x9e   :  { %vm535_vm14 = vcmp.lt.f32.partialorder %v531_v21, %v507_v10  ;;  %vm536_vm15 = vcmp.lt.f32.partialorder %v532_v50, %v508_v11  ;;  %v512_v41 = vsel %vm503_vm10, %v509_v26, %v480_v57  ;;  %v513_v30 = vsel %vm504_vm11, %v509_v26, %v481_v58 }
  0x9f   :  { %v537_v31 = vsel %vm533_vm12, %v529_v49, %v505_v6  ;;  %v538_v53 = vsel %vm534_vm13, %v530_v20, %v506_v7  ;;  %v1241_v61 = vsel %vm535_vm14, %v531_v21, %v507_v10  ;;  %v1244_v32 = vsel %vm536_vm15, %v532_v50, %v508_v11 }
  0xa0   :  { %v542_v33 = vsel %vm533_vm12, %v541_v39, %v510_v12  ;;  %v543_v54 = vsel %vm534_vm13, %v541_v39, %v511_v13  ;;  %v556_v55 = vadd.f32 %v552_v51, %v547_v18  ;;  %v557_v34 = vadd.f32 %v553_v23, %v548_v19  ;;  %v720_v18 = vld [vmem:[%s1318_s4 + $0x10] sm:$0xff] }
  0xa1   :  { %v558_v56 = vadd.f32 %v554_v52, %v549_v47  ;;  %v559_v35 = vadd.f32 %v555_v60, %v550_v48  ;;  %v544_v57 = vsel %vm535_vm14, %v541_v39, %v512_v41  ;;  %v545_v58 = vsel %vm536_vm15, %v541_v39, %v513_v30  ;;  %v721_v47 = vld [vmem:[%s1318_s4 + $0x18] sm:$0xff] }
  0xa2   :  { %v560_v59 = vstv %s1218_s22  ;;  %v578_v62 = vstv %s1216_s21  ;;  %v573_v26 = vstv %s1226_s24  ;;  %v583_v5 = vstv %s1224_s23 }
  0xa3   :  { %v561_v36 = vadd.f32 %v560_v59, %v556_v55  ;;  %v562_v24 = vadd.f32 %v560_v59, %v557_v34  ;;  %v563_v25 = vadd.f32 %v560_v59, %v558_v56  ;;  %v564_v37 = vadd.f32 %v560_v59, %v559_v35 }
  0xa4   :  { %v579_v63 = vmul.f32 %v578_v62, %v825_v0  ;;  %v580_v4 = vmul.f32 %v578_v62, %v830_v1  ;;  %v581_v8 = vmul.f32 %v578_v62, %v835_v2  ;;  %v582_v9 = vmul.f32 %v578_v62, %v840_v3 }
  0xa5   :  { %vm565_vm0 = vcmp.lt.f32.partialorder %v561_v36, %v537_v31  ;;  %vm566_vm1 = vcmp.lt.f32.partialorder %v562_v24, %v538_v53  ;;  %vm567_vm2 = vcmp.lt.f32.partialorder %v563_v25, %v1241_v61  ;;  %vm568_vm3 = vcmp.lt.f32.partialorder %v564_v37, %v1244_v32 }
  0xa6   :  { %v569_v6 = vsel %vm565_vm0, %v561_v36, %v537_v31  ;;  %v570_v7 = vsel %vm566_vm1, %v562_v24, %v538_v53  ;;  %v571_v0 = vsel %vm567_vm2, %v563_v25, %v1241_v61  ;;  %v572_v1 = vsel %vm568_vm3, %v564_v37, %v1244_v32 }
  0xa7   :  { %v574_v10 = vsel %vm565_vm0, %v573_v26, %v542_v33  ;;  %v575_v11 = vsel %vm566_vm1, %v573_v26, %v543_v54  ;;  %v584_v12 = vmul.f32 %v877_v22, %v583_v5  ;;  %v585_v13 = vmul.f32 %v894_v27, %v583_v5 }
  0xa8   :  { %v586_v14 = vmul.f32 %v899_v28, %v583_v5  ;;  %v587_v2 = vmul.f32 %v904_v29, %v583_v5  ;;  %v592_v15 = vstv %s1246_s1  ;;  %v605_v3 = vstv %s1248_s0 }
  0xa9   :  { %v610_v16 = vstv %s1236_s25  ;;  %v615_v17 = vstv %s1238_s26  ;;  %v588_v38 = vadd.f32 %v584_v12, %v579_v63  ;;  %v589_v39 = vadd.f32 %v585_v13, %v580_v4 }
  0xaa   :  { %v590_v40 = vadd.f32 %v586_v14, %v581_v8  ;;  %v591_v42 = vadd.f32 %v587_v2, %v582_v9  ;;  %v611_v44 = vmul.f32 %v718_v43, %v610_v16  ;;  %v612_v46 = vmul.f32 %v719_v45, %v610_v16 }
  0xab   :  { %v613_v19 = vmul.f32 %v720_v18, %v610_v16  ;;  %v614_v48 = vmul.f32 %v721_v47, %v610_v16  ;;  %v593_v49 = vadd.f32 %v592_v15, %v588_v38  ;;  %v594_v20 = vadd.f32 %v592_v15, %v589_v39 }
  0xac   :  { %v595_v21 = vadd.f32 %v592_v15, %v590_v40  ;;  %v596_v50 = vadd.f32 %v592_v15, %v591_v42  ;;  %v616_v51 = vmul.f32 %v877_v22, %v615_v17  ;;  %v617_v23 = vmul.f32 %v894_v27, %v615_v17 }
  0xad   :  { %v618_v52 = vmul.f32 %v899_v28, %v615_v17  ;;  %v619_v60 = vmul.f32 %v904_v29, %v615_v17  ;;  %vm597_vm4 = vcmp.lt.f32.partialorder %v593_v49, %v569_v6  ;;  %vm598_vm5 = vcmp.lt.f32.partialorder %v594_v20, %v570_v7 }
  0xae   :  { %vm599_vm6 = vcmp.lt.f32.partialorder %v595_v21, %v571_v0  ;;  %vm600_vm7 = vcmp.lt.f32.partialorder %v596_v50, %v572_v1  ;;  %v576_v41 = vsel %vm567_vm2, %v573_v26, %v544_v57  ;;  %v577_v30 = vsel %vm568_vm3, %v573_v26, %v545_v58 }
  0xaf   :  { %v601_v31 = vsel %vm597_vm4, %v593_v49, %v569_v6  ;;  %v602_v22 = vsel %vm598_vm5, %v594_v20, %v570_v7  ;;  %v603_v53 = vsel %vm599_vm6, %v595_v21, %v571_v0  ;;  %v604_v27 = vsel %vm600_vm7, %v596_v50, %v572_v1 }
  0xb0   :  { %v606_v33 = vsel %vm597_vm4, %v605_v3, %v574_v10  ;;  %v607_v28 = vsel %vm598_vm5, %v605_v3, %v575_v11  ;;  %v620_v54 = vadd.f32 %v616_v51, %v611_v44  ;;  %v621_v29 = vadd.f32 %v617_v23, %v612_v46 }
  0xb1   :  { %v622_v55 = vadd.f32 %v618_v52, %v613_v19  ;;  %v623_v34 = vadd.f32 %v619_v60, %v614_v48  ;;  %v608_v56 = vsel %vm599_vm6, %v605_v3, %v576_v41  ;;  %v609_v35 = vsel %vm600_vm7, %v605_v3, %v577_v30 }
  0xb2   :  { %v624_v59 = vstv %s1276_s27  ;;  %v633_v62 = vstv %s1278_s28 }
  0xb3   :  { %v625_v61 = vadd.f32 %v624_v59, %v620_v54  ;;  %v626_v36 = vadd.f32 %v624_v59, %v621_v29  ;;  %v627_v57 = vadd.f32 %v624_v59, %v622_v55  ;;  %v628_v24 = vadd.f32 %v624_v59, %v623_v34 }
  0xb5   :  { %vm629_vm8 = vcmp.lt.f32.partialorder %v625_v61, %v601_v31  ;;  %vm630_vm9 = vcmp.lt.f32.partialorder %v626_v36, %v602_v22  ;;  %vm631_vm10 = vcmp.lt.f32.partialorder %v627_v57, %v603_v53  ;;  %vm632_vm11 = vcmp.lt.f32.partialorder %v628_v24, %v604_v27 }
  0xb6   :  { %v634_v32 = vsel %vm629_vm8, %v633_v62, %v606_v33  ;;  %v635_v58 = vsel %vm630_vm9, %v633_v62, %v607_v28  ;;  %v636_v25 = vsel %vm631_vm10, %v633_v62, %v608_v56  ;;  %v637_v37 = vsel %vm632_vm11, %v633_v62, %v609_v35 }
  0xb7   :  { %638 = vst [vmem:[%s1319_s5] sm:$0xff] %v634_v32  ;;  %639 = vst [vmem:[%s1319_s5 + $0x8] sm:$0xff] %v635_v58 }
  0xb8   :  { %640 = vst [vmem:[%s1319_s5 + $0x10] sm:$0xff] %v636_v25  ;;  %641 = vst [vmem:[%s1319_s5 + $0x18] sm:$0xff] %v637_v37 }
  0xb9   :  { %646 = vsyncpa [#allocation3], 1 }
  0xba   :  { %647 = vsyncpa [#allocation5], 1 }
  0xbb   :  { %648 = vsyncpa [#allocation8], 1 }

</bundles_post_ra>
